<compile_context>
chip_gen: v6e
topology: v6e:2x2x1
jax: 0.10.0
libtpu: 0.0.40
codegen_flags: <defaults>
</compile_context>

<pallas_src>
import jax
import jax.numpy as jnp
from jax.experimental import pallas as pl
from jax.experimental.pallas import tpu as pltpu


def _round_up(x, m):
    return ((x + m - 1) // m) * m


def _sublane_multiple(dtype):
    """Min second-to-last tile dim: 8 (f32), 16 (bf16), 32 (int8/fp8)."""
    return max(8, 32 // jnp.dtype(dtype).itemsize)


# ---------------------------------------------------------------------------
# Kernels
# ---------------------------------------------------------------------------
def _mvn_kernel_simple(z_ref, lt_ref, m_ref, o_ref):
    """o = z @ Lt + m for one batch tile; full feature dim in one MXU pass."""
    y = jnp.dot(z_ref[...], lt_ref[...], preferred_element_type=jnp.float32)
    o_ref[...] = (y + m_ref[...].astype(jnp.float32)).astype(o_ref.dtype)


def _mvn_kernel_ktiled(z_ref, lt_ref, m_ref, o_ref, acc_ref):
    """Large-D variant: accumulate partial products over the K grid axis."""
    k = pl.program_id(2)

    @pl.when(k == 0)
    def _():
        acc_ref[...] = jnp.zeros_like(acc_ref)

    acc_ref[...] += jnp.dot(z_ref[...], lt_ref[...],
                            preferred_element_type=jnp.float32)

    @pl.when(k == pl.num_programs(2) - 1)
    def _():
        o_ref[...] = (acc_ref[...] + m_ref[...].astype(jnp.float32)
                      ).astype(o_ref.dtype)


# ---------------------------------------------------------------------------
# Wrapper
# ---------------------------------------------------------------------------
def reparameterized_mvn_linear_forward(
        z, m, L, n_patch, n_z, *,
        tm=1024,
        lt=None,                        # optional precomputed L.T (hoist O(D^2) prep)
        allow_xla_fallback=True,
        ktile_threshold_bytes=8 << 20,  # Lt footprint above which we K/N-tile
):
    """JAX/Pallas port of ReparameterizedMVN_Linear.forward.

    z : array reshapeable to (N, n_patch * n_z)
    m : (1, n_patch * n_z) mean
    L : (n_patch * n_z, n_patch * n_z) "std" matrix
    returns : (N, n_patch, n_z)
    """
    D = n_patch * n_z
    z2d = z.reshape((-1, D))
    N = z2d.shape[0]
    dtype = z2d.dtype
    itemsize = jnp.dtype(dtype).itemsize

    # Parameter prep (callers under jit / repeated calls should pass `lt=`).
    lt_mat = (L.T if lt is None else lt).astype(dtype)
    m2d = m.reshape(1, D).astype(dtype)

    # Tiny problems: fixed pallas_call overhead dominates; plain XLA is faster.
    if allow_xla_fallback and N * D <= 4096:
        y = m2d + jnp.matmul(z2d, lt_mat, preferred_element_type=jnp.float32
                             ).astype(dtype)
        return y.reshape(-1, n_patch, n_z)

    # ---- batch tiling: dtype-aware sublane rounding, large tiles ----
    sub = _sublane_multiple(dtype)
    tm_eff = max(sub, min(_round_up(tm, sub), _round_up(N, sub)))
    n_batch_tiles = pl.cdiv(N, tm_eff)

    cost = pl.CostEstimate(
        flops=int(2 * N * D * D),
        transcendentals=0,
        bytes_accessed=int(itemsize * (2 * N * D + D * D + D)),
    )

    use_ktile = (D % 128 == 0) and (D * D * itemsize > ktile_threshold_bytes)

    if not use_ktile:
        # ---- simple path: whole D per tile, Lt resident across the grid ----
        footprint = itemsize * (2 * tm_eff * D      # z (double-buffered)
                                + 2 * tm_eff * D    # out (double-buffered)
                                + 2 * D * D         # Lt
                                + 2 * D)            # m
        vmem_limit = (int(min(footprint + (8 << 20), 48 << 20))
                      if footprint > (24 << 20) else None)

        out = pl.pallas_call(
            _mvn_kernel_simple,
            out_shape=jax.ShapeDtypeStruct((N, D), dtype),
            grid_spec=pltpu.PrefetchScalarGridSpec(
                num_scalar_prefetch=0,
                grid=(n_batch_tiles,),
                in_specs=[
                    pl.BlockSpec((tm_eff, D), lambda i: (i, 0)),  # z tile
                    pl.BlockSpec((D, D), lambda i: (0, 0)),       # Lt (resident)
                    pl.BlockSpec((1, D), lambda i: (0, 0)),       # mean (resident)
                ],
                out_specs=pl.BlockSpec((tm_eff, D), lambda i: (i, 0)),
            ),
            compiler_params=pltpu.CompilerParams(
                dimension_semantics=("parallel",),
                vmem_limit_bytes=vmem_limit,
            ),
            cost_estimate=cost,
        )(z2d, lt_mat, m2d)
    else:
        # ---- large-D path: 3-D grid (batch, out-cols, K) with accumulator ----
        tkn = 512 if D % 512 == 0 else (256 if D % 256 == 0 else 128)
        footprint = itemsize * (2 * tm_eff * tkn    # z tiles
                                + 2 * tkn * tkn     # Lt tiles
                                + 2 * tkn           # m tiles
                                + 2 * tm_eff * tkn  # out tiles
                                ) + 4 * tm_eff * tkn  # f32 accumulator
        vmem_limit = (int(min(footprint + (8 << 20), 48 << 20))
                      if footprint > (24 << 20) else None)

        out = pl.pallas_call(
            _mvn_kernel_ktiled,
            out_shape=jax.ShapeDtypeStruct((N, D), dtype),
            grid_spec=pltpu.PrefetchScalarGridSpec(
                num_scalar_prefetch=0,
                grid=(n_batch_tiles, D // tkn, D // tkn),
                in_specs=[
                    pl.BlockSpec((tm_eff, tkn), lambda i, j, k: (i, k)),  # z
                    pl.BlockSpec((tkn, tkn), lambda i, j, k: (k, j)),     # Lt
                    pl.BlockSpec((1, tkn), lambda i, j, k: (0, j)),       # mean
                ],
                out_specs=pl.BlockSpec((tm_eff, tkn), lambda i, j, k: (i, j)),
                scratch_shapes=[pltpu.VMEM((tm_eff, tkn), jnp.float32)],
            ),
            compiler_params=pltpu.CompilerParams(
                dimension_semantics=("parallel", "parallel", "arbitrary"),
                vmem_limit_bytes=vmem_limit,
            ),
            cost_estimate=cost,
        )(z2d, lt_mat, m2d)

    return out.reshape(-1, n_patch, n_z)


# ---------------------------------------------------------------------------
# Self-test
# ---------------------------------------------------------------------------
if __name__ == "__main__":
    key = jax.random.PRNGKey(0)

    def ref_forward(z, m, L, n_patch, n_z):
        D = n_patch * n_z
        return (m + jnp.matmul(z.reshape(-1, D), L.T,
                               precision=jax.lax.Precision.HIGHEST)
                ).reshape(-1, n_patch, n_z)

    def make_params(k, D):
        k_m, k_L = jax.random.split(k)
        m = jax.random.normal(k_m, (1, D), dtype=jnp.float32)
        L = (jnp.eye(D, dtype=jnp.float32)
             + 0.05 * jax.random.normal(k_L, (D, D), dtype=jnp.float32))
        return m, L

    # ---- test 1: module-default tiny shape (n_patch=4, n_z=8), forced Pallas
    n_patch, n_z, N = 4, 8, 8
    k0, k1, key = jax.random.split(key, 3)
    m, L = make_params(k0, n_patch * n_z)
    z = jax.random.normal(k1, (N, n_patch, n_z), dtype=jnp.float32)
    out = jax.block_until_ready(
        reparameterized_mvn_linear_forward(z, m, L, n_patch, n_z,
                                           allow_xla_fallback=False))
    ref = ref_forward(z, m, L, n_patch, n_z)
    assert out.shape == (N, n_patch, n_z)
    assert jnp.allclose(out, ref, atol=1e-3, rtol=1e-3)

    # Small-problem XLA fast path gives the same answer.
    out_fast = jax.block_until_ready(
        reparameterized_mvn_linear_forward(z, m, L, n_patch, n_z))
    assert jnp.allclose(out_fast, ref, atol=1e-3, rtol=1e-3)

    # ---- test 2: lane-dense D=128 with a ragged batch (partial last block)
    n_patch, n_z, N = 4, 32, 300
    k0, k1, key = jax.random.split(key, 3)
    m, L = make_params(k0, n_patch * n_z)
    z = jax.random.normal(k1, (N, n_patch, n_z), dtype=jnp.float32)
    out = jax.block_until_ready(
        reparameterized_mvn_linear_forward(z, m, L, n_patch, n_z, tm=128))
    assert out.shape == (N, n_patch, n_z)
    assert jnp.allclose(out, ref_forward(z, m, L, n_patch, n_z),
                        atol=1e-3, rtol=1e-3)

    # ---- test 3: large-D K/N-tiled path with f32 accumulator (forced) ----
    n_patch, n_z, N = 8, 128, 64       # D = 1024
    k0, k1, key = jax.random.split(key, 3)
    m, L = make_params(k0, n_patch * n_z)
    z = jax.random.normal(k1, (N, n_patch, n_z), dtype=jnp.float32)
    out = jax.block_until_ready(
        reparameterized_mvn_linear_forward(z, m, L, n_patch, n_z,
                                           ktile_threshold_bytes=1 << 20))
    assert out.shape == (N, n_patch, n_z)
    assert jnp.allclose(out, ref_forward(z, m, L, n_patch, n_z),
                        atol=2e-3, rtol=2e-3)

    print("KERNEL_OK")
</pallas_src>

<mosaic_0001>
module attributes {stable_mosaic.version = 11 : i64} {
  func.func @_mvn_kernel_simple(%arg0: i32, %arg1: memref<8x32xf32, #tpu.memory_space<vmem>>, %arg2: memref<32x32xf32, #tpu.memory_space<vmem>>, %arg3: memref<1x32xf32, #tpu.memory_space<vmem>>, %arg4: memref<8x32xf32, #tpu.memory_space<vmem>>) attributes {dimension_semantics = [#tpu.dimension_semantics<parallel>], iteration_bounds = array<i64: 1>, scalar_prefetch = 0 : i64, scratch_operands = 0 : i64, tpu.core_type = #tpu.core_type<tc>, window_params = [{transform_indices = @transform_0, window_bounds = array<i64: 8, 32>}, {pipeline_mode = #tpu.pipeline_mode<synchronous>, transform_indices = @transform_1, window_bounds = array<i64: 32, 32>}, {pipeline_mode = #tpu.pipeline_mode<synchronous>, transform_indices = @transform_2, window_bounds = array<i64: 1, 32>}, {transform_indices = @transform_3, window_bounds = array<i64: 8, 32>}]} {
    %c0 = arith.constant 0 : index
    %c0_0 = arith.constant 0 : index
    %0 = vector.load %arg1[%c0, %c0_0] : memref<8x32xf32, #tpu.memory_space<vmem>>, vector<8x32xf32>
    %c0_1 = arith.constant 0 : index
    %c0_2 = arith.constant 0 : index
    %1 = vector.load %arg2[%c0_1, %c0_2] : memref<32x32xf32, #tpu.memory_space<vmem>>, vector<32x32xf32>
    %cst = arith.constant dense<0.000000e+00> : vector<8x32xf32>
    %2 = tpu.matmul %0, %1, %cst {dimension_numbers = #tpu.dot_dimension_numbers<[1], [0], [0], [1], [0, 0, 1, 1], [], []>} : vector<8x32xf32>, vector<32x32xf32>, vector<8x32xf32> -> vector<8x32xf32>
    %c0_3 = arith.constant 0 : index
    %c0_4 = arith.constant 0 : index
    %3 = vector.load %arg3[%c0_3, %c0_4] : memref<1x32xf32, #tpu.memory_space<vmem>>, vector<1x32xf32>
    %4 = vector.broadcast %3 : vector<1x32xf32> to vector<8x32xf32>
    %5 = arith.addf %2, %4 : vector<8x32xf32>
    %c0_5 = arith.constant 0 : index
    %c0_6 = arith.constant 0 : index
    %6 = vector.load %arg4[%c0_5, %c0_6] : memref<8x32xf32, #tpu.memory_space<vmem>>, vector<8x32xf32>
    tpu.vector_store %arg4[%c0_5, %c0_6], %5 {strides = array<i32>} : memref<8x32xf32, #tpu.memory_space<vmem>>, vector<8x32xf32>,
    return
  }
  func.func @transform_0(%arg0: i32) -> (i32, i32) {
    %c0_i32 = arith.constant 0 : i32
    %c0_i32_0 = arith.constant 0 : i32
    return %arg0, %c0_i32 : i32, i32
  }
  func.func @transform_1(%arg0: i32) -> (i32, i32) {
    %c0_i32 = arith.constant 0 : i32
    %c0_i32_0 = arith.constant 0 : i32
    %c0_i32_1 = arith.constant 0 : i32
    return %c0_i32, %c0_i32_0 : i32, i32
  }
  func.func @transform_2(%arg0: i32) -> (i32, i32) {
    %c0_i32 = arith.constant 0 : i32
    %c0_i32_0 = arith.constant 0 : i32
    %c0_i32_1 = arith.constant 0 : i32
    return %c0_i32, %c0_i32_0 : i32, i32
  }
  func.func @transform_3(%arg0: i32) -> (i32, i32) {
    %c0_i32 = arith.constant 0 : i32
    %c0_i32_0 = arith.constant 0 : i32
    return %arg0, %c0_i32 : i32, i32
  }
}

</mosaic_0001>

<bundles_post_ra>
// kernel: tpu_custom_call.1
= control target key start
LH: loop header
LB: loop body
LE: loop exit
PB: predicated region body
PF: predicated region fallthrough
CT: control target
= control target key end

     0   :  { %8 = vsyncpa [#allocation3], 0  ;;  %s274_s0 = inlined_call_operand.hbm [shape: f32[8,32], index: 0, kind: input, shape index: {}]   ;;  %s275_s1 = inlined_call_operand.hbm [shape: f32[32,32], index: 1, kind: input, shape index: {}]   ;;  %s276_s2 = inlined_call_operand.vmem [shape: f32[1,32], index: 2, kind: input, shape index: {}]   ;;  %s277_s3 = inlined_call_operand.hbm [shape: f32[8,32], index: 3, kind: output, shape index: {}]  }
   0x1   :  { %9 = vsyncpa [#allocation6], 0 }
   0x2   :  { %10 = vsyncpa [#allocation4], 0  ;;  %s235_s12 = smov [#allocation2]   ;;  %s236_s14 = smov [#allocation5]  }
   0x3   :  { %s17_s13 = sshll.u32 %s235_s12, 4  ;;  %s26_s15 = sshll.u32 %s236_s14, 4  ;;  %s18_s13 = int_to_ptr.vmem [resolvable:$true] %s17_s13  ;;  %s27_s15 = int_to_ptr.vmem [resolvable:$true] %s26_s15 }
   0x4   :  { %s177_s16 = scalar_lea.vmem %s18_s13, 128  ;;  %p182_p1 = scmp.lt.s32.totalorder %s18_s13, %s18_s13 }
   0x5   :  { %p178_p0 = scmp.ne.s32.totalorder %s18_s13, %s177_s16  ;;  %p183_p2 = scmp.lt.s32.totalorder %s177_s16, %s177_s16 }
   0x7   :  { %p184_p3 = por %p183_p2, %p182_p1 }
   0x9   :  { %p185_p4 = pnand %p184_p3, %p178_p0 }
   0xb   :  { %188 = shalt.err (!%p185_p4)
}
   0xc   :  { %20 = dma.hbm_to_vmem [thread:$0]  %s274_s0, 128, %s18_s13, [#allocation3]  }
   0xd   :  { %s197_s19 = scalar_lea.vmem %s27_s15, 512  ;;  %p202_p6 = scmp.lt.s32.totalorder %s27_s15, %s27_s15 }
   0xe   :  { %p198_p5 = scmp.ne.s32.totalorder %s27_s15, %s197_s19  ;;  %p203_p7 = scmp.lt.s32.totalorder %s197_s19, %s197_s19 }
  0x10   :  { %p204_p8 = por %p203_p7, %p202_p6 }
  0x12   :  { %p205_p9 = pnand %p204_p8, %p198_p5 }
  0x14   :  { %208 = shalt.err (!%p205_p9)
}
  0x15   :  { %s237_s20 = smov 128   ;;  %s238_s21 = smov 8  }
  0x16   :  { %32 = dma.hbm_to_vmem [thread:$0]  %s275_s1, 512, %s27_s15, [#allocation6], %s237_s20, %s237_s20, %s238_s21  }
  0x17   :  { %229 = dma.done.wait [#allocation3], 128  }
  0x18   :  { %230 = vsyncadd [#allocation3], 4294967168 }
  0x19   :  { %231 = dma.done.wait [#allocation6], 512  }
  0x1a   :  { %232 = vsyncadd [#allocation6], 4294966784  ;;  %v239_v0 = vmov 0.0   ;;  %vm240_vm0 = vmmov 0   ;;  %v45_v1 = vld [vmem:[#allocation5 + $0x18] sm:$0xff]  ;;  %v44_v2 = vld [vmem:[#allocation5 + $0x10] sm:$0xff] }
  0x1b   :  { %151 = vmatprep.subr.mxu0 %v239_v0  ;;  %159 = vmatprep.mubr.msk.f32.mxu0 %vm240_vm0, %v239_v0  ;;  %v43_v3 = vld [vmem:[#allocation5 + $0x8] sm:$0xff]  ;;  %v42_v4 = vld [vmem:[#allocation5] sm:$0xff]  ;;  %v41_v5 = vld [vmem:[#allocation2] sm:$0xff]  ;;  %vm53_vm1 = vcmask 261120   ;;  %s241_s24 = smov [#allocation7]  }
  0x1c   :  { %152 = vmatpush3.msra.mxu0 %v45_v1  ;;  %v144_v6 = vld [vmem:[%s276_s2] ss:$0 sm:$0xff]  ;;  %s134_s25 = sshll.u32 %s241_s24, 4  ;;  %s135_s25 = int_to_ptr.vmem [resolvable:$true] %s134_s25 }
  0x1d   :  { %153 = vmatprep.subr.mxu0 %v239_v0  ;;  %s209_s26 = scalar_lea.vmem %s135_s25, 128  ;;  %p214_p11 = scmp.lt.s32.totalorder %s135_s25, %s135_s25 }
  0x1e   :  { %154 = vmatpush3.msra.mxu0 %v44_v2  ;;  %p210_p10 = scmp.ne.s32.totalorder %s135_s25, %s209_s26  ;;  %p215_p12 = scmp.lt.s32.totalorder %s209_s26, %s209_s26 }
  0x1f   :  { %155 = vmatprep.subr.mxu0 %v239_v0 }
  0x20   :  { %156 = vmatpush3.msra.mxu0 %v43_v3  ;;  %p216_p13 = por %p215_p12, %p214_p11 }
  0x21   :  { %157 = vmatprep.subr.mxu0 %v239_v0 }
  0x22   :  { %158 = vmatpush3.msra.mxu0 %v42_v4  ;;  %p217_p0 = pnand %p216_p13, %p210_p10 }
  0x23   :  { %160 = vmatmul.mubr.msk.f32.vlgmr.msra.gmra.mxu0 %vm53_vm1, %v41_v5 }
  0xe3   :  { %v123_v7 = vpop.f32.mrf.mxu0 }
  0xe4   :  { %v124_v8 = vadd.f32 %v144_v6, %v123_v7 }
  0xe5   :  { %v161_v9 = vpop.f32.mrf.mxu0 }
  0xe6   :  { %127 = vst.msk [vmem:[#allocation7] sm:$0xff] %vm53_vm1, %v124_v8 }
  0xe7   :  { %220 = shalt.err (!%p217_p0)
}
  0xe8   :  { %137 = dma.vmem_to_hbm [thread:$0]  %s135_s25, 128, %s277_s3, [#allocation4]  }
  0xe9   :  { %233 = dma.done.wait [#allocation4], 128  }
  0xea   :  { %234 = vsyncadd [#allocation4], 4294967168 }
  0xeb   :  { %141 = vsyncpa [#allocation3], 1 }
  0xec   :  { %142 = vsyncpa [#allocation6], 1 }
  0xed   :  { %143 = vsyncpa [#allocation4], 1 }

</bundles_post_ra>
